<compile_context>
chip_gen: v7x
topology: tpu7x:2x2x1
jax: 0.10.0
libtpu: 0.0.40
codegen_flags: <defaults>
</compile_context>

<pallas_src>
import functools

import jax
import jax.numpy as jnp
import numpy as np
from jax.experimental import pallas as pl
from jax.experimental.pallas import tpu as pltpu


def _dwconv_kernel(x_ref, w_ref, o_ref, xh_ref, *, K, Tt, halo_pad):
    # x_ref : (Tt, Ct)            current time tile (batch dim squeezed)
    # w_ref : (K, Ct)             depthwise taps (tap k broadcasts over time)
    # o_ref : (Tt, Ct)            output tile
    # xh_ref: (Tt + halo_pad, Ct) scratch: rows [off : off+K-1] hold the carried causal
    #         halo (last K-1 stream rows before this tile, zeros at the stream start),
    #         rows [halo_pad : halo_pad+Tt] hold the current tile (8-aligned copy-in).
    halo = K - 1
    off = halo_pad - halo

    if halo > 0:
        ti = pl.program_id(2)

        @pl.when(ti == 0)
        def _init_halo():  # causal zero padding at the start of every (c, b) stream
            xh_ref[0:halo_pad, :] = jnp.zeros(
                (halo_pad, xh_ref.shape[-1]), xh_ref.dtype)

        xh_ref[halo_pad:, :] = x_ref[...]          # 8-aligned full-tile copy-in
        src, base = xh_ref, off
    else:
        src, base = x_ref, 0

    # out[t] = sum_k w[k] * stream[t + k - (K-1)]  (causal cross-correlation).
    # TODO(synk): tap slices start at non-8-aligned sublane offsets; if the kernel ever
    # becomes load-slot bound (large K / data resident in VMEM) switch to pltpu.roll.
    w = w_ref[...].astype(jnp.float32)
    acc = src[base:base + Tt, :].astype(jnp.float32) * w[0:1, :]
    for k in range(1, K):                           # small static unroll over taps
        acc = acc + src[base + k:base + k + Tt, :].astype(jnp.float32) * w[k:k + 1, :]
    o_ref[...] = acc.astype(o_ref.dtype)            # single lane-dense store

    if halo > 0:
        @pl.when(ti + 1 < pl.num_programs(2))
        def _carry_halo():                          # last K-1 stream rows -> next tile
            tail = xh_ref[halo_pad + Tt - halo:halo_pad + Tt, :]
            xh_ref[off:halo_pad, :] = tail


def depthwise_causal_conv(x, weight, *, time_tile=None):
    """x: (B, T, C); weight: (K, C) with weight[k, c] == torch_weight[c, 0, k].

    Returns (B, T, C), same dtype as x (f32 accumulation in-kernel).
    """
    B, T, C = x.shape
    K, Cw = weight.shape
    assert Cw == C and K >= 1

    # Channel tile: lane-dense multiple of 128 when C allows; otherwise one full-C block
    # (no HBM-side channel padding and no output re-slice => no extra HBM traffic).
    if C % 128 == 0:
        Ct = next(c for c in (512, 256, 128) if C % c == 0)
    else:
        Ct = C
    num_c = C // Ct

    # Time tile: bounded per-step VMEM independent of T. ~2 MiB per block buffer keeps the
    # double-buffered in+out (+ halo scratch) around ~10 MiB in f32 -> safe on v5e's 16 MiB
    # default scoped VMEM and leaves headroom on v7x's 64 MiB VMEM; >=512 rows at Ct<=512
    # stays near the measured HBM roofline knee.
    itemsize = jnp.dtype(x.dtype).itemsize
    if time_tile is None:
        tile_budget = 2 * 1024 * 1024
        tt_cap = max(8, (tile_budget // (Ct * itemsize)) // 8 * 8)
        Tt = T if T <= tt_cap else tt_cap
    else:
        Tt = min(T, int(time_tile))
    assert Tt == T or Tt % 8 == 0, "time tile must be a multiple of 8 or cover all of T"
    num_t = pl.cdiv(T, Tt)
    assert num_t == 1 or Tt >= K - 1, "time tile must cover the K-1 causal halo"

    halo = K - 1
    halo_pad = ((halo + 7) // 8) * 8 if halo > 0 else 0

    kernel = functools.partial(_dwconv_kernel, K=K, Tt=Tt, halo_pad=halo_pad)

    return pl.pallas_call(
        kernel,
        out_shape=jax.ShapeDtypeStruct((B, T, C), x.dtype),
        grid_spec=pltpu.PrefetchScalarGridSpec(
            num_scalar_prefetch=0,
            # channel-tile outermost (weight block constant across inner steps), batch
            # next, time-tile innermost and sequential (carries the causal halo).
            grid=(num_c, B, num_t),
            in_specs=[
                pl.BlockSpec((None, Tt, Ct), lambda c, b, t: (b, t, c)),
                pl.BlockSpec((K, Ct), lambda c, b, t: (0, c)),
            ],
            out_specs=pl.BlockSpec((None, Tt, Ct), lambda c, b, t: (b, t, c)),
            scratch_shapes=[pltpu.VMEM((Tt + halo_pad, Ct), x.dtype)],
        ),
        compiler_params=pltpu.CompilerParams(
            dimension_semantics=("parallel", "parallel", "arbitrary"),
            vmem_limit_bytes=32 * 1024 * 1024,
        ),
    )(x, weight)


def _reference(x, weight):
    """Pure-JAX reference of the causal depthwise conv (same math as the PyTorch module)."""
    B, T, C = x.shape
    K, _ = weight.shape
    x_pad = jnp.pad(x, ((0, 0), (K - 1, 0), (0, 0)))        # causal left pad
    out = jnp.zeros((B, T, C), jnp.float32)
    for k in range(K):
        out = out + x_pad[:, k:k + T, :].astype(jnp.float32) * weight[k][None, None, :]
    return out


if __name__ == "__main__":
    B, T, C, K = 2, 16, 32, 4

    key = jax.random.PRNGKey(0)
    kx, kw = jax.random.split(key)
    x = jax.random.normal(kx, (B, T, C), dtype=jnp.float32)

    # Deterministic weights mimicking nn.Conv1d depthwise weight (C, 1, K);
    # stored as (K, C) so tap k broadcasts over the lane (channel) axis in-kernel.
    fan_in = 1 * K
    bound = 1.0 / np.sqrt(fan_in)
    w_torch_layout = jax.random.uniform(kw, (C, 1, K), dtype=jnp.float32,
                                        minval=-bound, maxval=bound)
    weight = jnp.transpose(w_torch_layout[:, 0, :], (1, 0))  # (K, C)

    ref = _reference(x, weight)

    # Default path (single time tile for this small T).
    out = jax.block_until_ready(depthwise_causal_conv(x, weight))
    np.testing.assert_allclose(np.asarray(out), np.asarray(ref), rtol=1e-5, atol=1e-5)

    # Force the time-tiled path to exercise the carried causal halo across grid steps.
    out_tiled = jax.block_until_ready(depthwise_causal_conv(x, weight, time_tile=8))
    np.testing.assert_allclose(np.asarray(out_tiled), np.asarray(ref), rtol=1e-5, atol=1e-5)

    print("KERNEL_OK")
</pallas_src>

<mosaic_0001>
module attributes {stable_mosaic.version = 11 : i64} {
  func.func @_dwconv_kernel(%arg0: i32, %arg1: i32, %arg2: i32, %arg3: memref<1x16x32xf32, #tpu.memory_space<vmem>>, %arg4: memref<4x32xf32, #tpu.memory_space<vmem>>, %arg5: memref<1x16x32xf32, #tpu.memory_space<vmem>>, %arg6: memref<24x32xf32, #tpu.memory_space<vmem>>) attributes {dimension_semantics = [#tpu.dimension_semantics<parallel>, #tpu.dimension_semantics<parallel>, #tpu.dimension_semantics<arbitrary>], iteration_bounds = array<i64: 1, 2, 1>, scalar_prefetch = 0 : i64, scratch_operands = 1 : i64, tpu.core_type = #tpu.core_type<tc>, window_params = [{transform_indices = @transform_0, window_bounds = array<i64: 1, 16, 32>}, {transform_indices = @transform_1, window_bounds = array<i64: 4, 32>}, {transform_indices = @transform_2, window_bounds = array<i64: 1, 16, 32>}]} {
    %c0_i32 = arith.constant 0 : i32
    %0 = arith.cmpi eq, %arg2, %c0_i32 : i32
    %1 = arith.extui %0 : i1 to i32
    %c0_i32_0 = arith.constant 0 : i32
    %2 = arith.cmpi ne, %1, %c0_i32_0 : i32
    scf.if %2 {
      %cst = arith.constant 0.000000e+00 : f32
      %33 = vector.broadcast %cst : f32 to vector<8x32xf32>
      %c0_16 = arith.constant 0 : index
      %c0_17 = arith.constant 0 : index
      %34 = vector.load %arg6[%c0_16, %c0_17] : memref<24x32xf32, #tpu.memory_space<vmem>>, vector<8x32xf32>
      tpu.vector_store %arg6[%c0_16, %c0_17], %33 {strides = array<i32>} : memref<24x32xf32, #tpu.memory_space<vmem>>, vector<8x32xf32>,
    } else {
    }
    %c0 = arith.constant 0 : index
    %c0_1 = arith.constant 0 : index
    %c0_2 = arith.constant 0 : index
    %3 = vector.load %arg3[%c0, %c0_1, %c0_2] : memref<1x16x32xf32, #tpu.memory_space<vmem>>, vector<1x16x32xf32>
    %4 = vector.shape_cast %3 : vector<1x16x32xf32> to vector<16x32xf32>
    %c8 = arith.constant 8 : index
    %c0_3 = arith.constant 0 : index
    %5 = vector.load %arg6[%c8, %c0_3] : memref<24x32xf32, #tpu.memory_space<vmem>>, vector<16x32xf32>
    tpu.vector_store %arg6[%c8, %c0_3], %4 {strides = array<i32>} : memref<24x32xf32, #tpu.memory_space<vmem>>, vector<16x32xf32>,
    %c0_4 = arith.constant 0 : index
    %c0_5 = arith.constant 0 : index
    %6 = vector.load %arg4[%c0_4, %c0_5] : memref<4x32xf32, #tpu.memory_space<vmem>>, vector<4x32xf32>
    %c5 = arith.constant 5 : index
    %c0_6 = arith.constant 0 : index
    %7 = vector.load %arg6[%c5, %c0_6] : memref<24x32xf32, #tpu.memory_space<vmem>>, vector<16x32xf32>
    %8 = vector.extract_strided_slice %6 {offsets = [0, 0], sizes = [1, 32], strides = [1, 1]} : vector<4x32xf32> to vector<1x32xf32>
    %9 = vector.broadcast %8 : vector<1x32xf32> to vector<16x32xf32>
    %10 = arith.mulf %7, %9 : vector<16x32xf32>
    %c6 = arith.constant 6 : index
    %c0_7 = arith.constant 0 : index
    %11 = vector.load %arg6[%c6, %c0_7] : memref<24x32xf32, #tpu.memory_space<vmem>>, vector<16x32xf32>
    %12 = vector.extract_strided_slice %6 {offsets = [1, 0], sizes = [1, 32], strides = [1, 1]} : vector<4x32xf32> to vector<1x32xf32>
    %13 = vector.broadcast %12 : vector<1x32xf32> to vector<16x32xf32>
    %14 = arith.mulf %11, %13 : vector<16x32xf32>
    %15 = arith.addf %10, %14 : vector<16x32xf32>
    %c7 = arith.constant 7 : index
    %c0_8 = arith.constant 0 : index
    %16 = vector.load %arg6[%c7, %c0_8] : memref<24x32xf32, #tpu.memory_space<vmem>>, vector<16x32xf32>
    %17 = vector.extract_strided_slice %6 {offsets = [2, 0], sizes = [1, 32], strides = [1, 1]} : vector<4x32xf32> to vector<1x32xf32>
    %18 = vector.broadcast %17 : vector<1x32xf32> to vector<16x32xf32>
    %19 = arith.mulf %16, %18 : vector<16x32xf32>
    %20 = arith.addf %15, %19 : vector<16x32xf32>
    %c8_9 = arith.constant 8 : index
    %c0_10 = arith.constant 0 : index
    %21 = vector.load %arg6[%c8_9, %c0_10] : memref<24x32xf32, #tpu.memory_space<vmem>>, vector<16x32xf32>
    %22 = vector.extract_strided_slice %6 {offsets = [3, 0], sizes = [1, 32], strides = [1, 1]} : vector<4x32xf32> to vector<1x32xf32>
    %23 = vector.broadcast %22 : vector<1x32xf32> to vector<16x32xf32>
    %24 = arith.mulf %21, %23 : vector<16x32xf32>
    %25 = arith.addf %20, %24 : vector<16x32xf32>
    %c0_11 = arith.constant 0 : index
    %c0_12 = arith.constant 0 : index
    %c0_13 = arith.constant 0 : index
    %26 = vector.load %arg5[%c0_11, %c0_12, %c0_13] : memref<1x16x32xf32, #tpu.memory_space<vmem>>, vector<1x16x32xf32>
    %27 = vector.shape_cast %26 : vector<1x16x32xf32> to vector<16x32xf32>
    %28 = vector.shape_cast %25 : vector<16x32xf32> to vector<1x16x32xf32>
    tpu.vector_store %arg5[%c0_11, %c0_12, %c0_13], %28 {strides = array<i32>} : memref<1x16x32xf32, #tpu.memory_space<vmem>>, vector<1x16x32xf32>,
    %c1_i32 = arith.constant 1 : i32
    %29 = arith.addi %arg2, %c1_i32 : i32
    %c1_i32_14 = arith.constant 1 : i32
    %30 = arith.cmpi slt, %29, %c1_i32_14 : i32
    %31 = arith.extui %30 : i1 to i32
    %c0_i32_15 = arith.constant 0 : i32
    %32 = arith.cmpi ne, %31, %c0_i32_15 : i32
    scf.if %32 {
      %c21 = arith.constant 21 : index
      %c0_16 = arith.constant 0 : index
      %33 = vector.load %arg6[%c21, %c0_16] : memref<24x32xf32, #tpu.memory_space<vmem>>, vector<3x32xf32>
      %c5_17 = arith.constant 5 : index
      %c0_18 = arith.constant 0 : index
      %34 = vector.load %arg6[%c5_17, %c0_18] : memref<24x32xf32, #tpu.memory_space<vmem>>, vector<3x32xf32>
      tpu.vector_store %arg6[%c5_17, %c0_18], %33 {strides = array<i32>} : memref<24x32xf32, #tpu.memory_space<vmem>>, vector<3x32xf32>,
    } else {
    }
    return
  }
  func.func @transform_0(%arg0: i32, %arg1: i32, %arg2: i32) -> (i32, i32, i32) {
    %c0_i32 = arith.constant 0 : i32
    return %arg1, %arg2, %arg0 : i32, i32, i32
  }
  func.func @transform_1(%arg0: i32, %arg1: i32, %arg2: i32) -> (i32, i32) {
    %c0_i32 = arith.constant 0 : i32
    %c0_i32_0 = arith.constant 0 : i32
    return %c0_i32, %arg0 : i32, i32
  }
  func.func @transform_2(%arg0: i32, %arg1: i32, %arg2: i32) -> (i32, i32, i32) {
    %c0_i32 = arith.constant 0 : i32
    return %arg1, %arg2, %arg0 : i32, i32, i32
  }
}

</mosaic_0001>

<bundles_post_ra>
// kernel: tpu_custom_call.1
= control target key start
LH: loop header
LB: loop body
LE: loop exit
PB: predicated region body
PF: predicated region fallthrough
CT: control target
= control target key end

     0   :  { %7 = vsyncpa [#allocation4], 0  ;;  %s891_s0 = inlined_call_operand.hbm [shape: f32[2,16,32], index: 0, kind: input, shape index: {}]   ;;  %s892_s1 = inlined_call_operand.hbm [shape: f32[4,32], index: 1, kind: input, shape index: {}]   ;;  %s893_s2 = inlined_call_operand.hbm [shape: f32[2,16,32], index: 2, kind: output, shape index: {}]  }
   0x1   :  { %9 = vsyncpa [#allocation4 + $0x1], 0 }
   0x2   :  { %10 = vsyncpa [#allocation7], 0 }
   0x3   :  { %11 = vsyncpa [#allocation5], 0 }
   0x4   :  { %13 = vsyncpa [#allocation5 + $0x1], 0  ;;  %s661_s9 = smov 0   ;;  %s663_s10 = smov 0  }
   0x5   :  { %s665_s11 = smov 0   ;;  %s667_s12 = smov 0  }
   0x6   :  { %s669_s13 = smov 0   ;;  %s671_s14 = smov 0  }
   0x7 LB: > { %s395_s15 = sadd.s32 4294967295, %s636_s14   ;;  %s396_s16 = sadd.s32 4294967294, %s636_s14   ;;  %s636_s14 = sphi %s671_s14, %s19_s14   ;;  %s632_s13 = sphi %s669_s13, %s921_s13   ;;  %s628_s12 = sphi %s667_s12, %s920_s12   ;;  %s624_s11 = sphi %s665_s11, %s919_s11   ;;  %s620_s10 = sphi %s663_s10, %s918_s10   ;;  %s616_s9 = sphi %s661_s9, %s917_s9  }
   0x8   : > { %s49_s17 = sadd.s32 1, %s624_s11  ;;  %p56_p0 = scmp.ne.s32.totalorder %s624_s11, %s620_s10 }
   0x9   : > { %p57_p1 = scmp.eq.s32.totalorder %s636_s14, 0  ;;  %p62_p2 = scmp.ne.s32.totalorder %s620_s10, %s616_s9 }
   0xa   : > { %p699_p3 = scmp.eq.s32.totalorder %s395_s15, 0  ;;  %p116_p4 = scmp.eq.s32.totalorder %s395_s15, 1 }
   0xb   : > { %p703_p5 = por %p57_p1, %p56_p0  ;;  %p122_p6 = scmp.eq.s32.totalorder %s396_s16, 1 }
   0xc   : > { %s900_s18 = scalar_select %p699_p3, 1, 0 }
   0xd   : > { %p709_p7 = por %p699_p3, %p62_p2  ;;  %p713_p8 = por %p116_p4, %p56_p0 }
   0xe   : > { %p717_p9 = por %p122_p6, %p62_p2  ;;  %p397_p10 = scmp.ge.s32.totalorder %s636_s14, 1 }
   0xf   : > { %s902_s20 = scalar_select %p709_p7, 1, 0 }
  0x10   : > { %s903_s21 = scalar_select %p713_p8, 1, 0 }
  0x11   : > { %s904_s22 = scalar_select %p717_p9, 1, 0 }
  0x12   : > { %p129_p11 = scmp.lt.s32.totalorder %s636_s14, 3  ;;  %s638_s24 = smov [#allocation6]  }
  0x13   : > { %s144_s25 = sshll.u32 %s638_s24, 4  ;;  %p435_p1 = scmp.lt.s32.totalorder %s636_s14, 2  ;;  %s145_s25 = int_to_ptr.vmem [resolvable:$true] %s144_s25 }
  0x14   : > { %p724_p13 = pnand %p397_p10, %p129_p11  ;;  %s34_s28 = sadd.s32 1, %s632_s13 }
  0x15   : > { %p733_p4 = pnand %p435_p1, %p703_p5  ;;  %p744_p6 = scmp.ge.s32.totalorder %s34_s28, 2 }
  0x16   : > { %s905_s23 = scalar_select %p724_p13, 1, 0 }
  0x17   : > { %p422_p0 = pneg %p724_p13  ;;  %s155_s30 = sand.u32 1, %s624_s11  }
  0x18   : > { %s906_s26 = scalar_select %p733_p4, 1, 0 }
  0x19   : > { %p739_p2 = pnand %p422_p0, %p699_p3  ;;  %s492_s5 = scalar_lea.hbm %s892_s1, 64 }
  0x1a   : > { %s908_s29 = scalar_select %p744_p6, 1, 0 }
  0x1b   : > { %p493_p5 = scmp.ne.s32.totalorder %s892_s1, %s492_s5  ;;  %p494_p10 = pneg %p739_p2 }
  0x1c   : > { %p499_p0 = scmp.lt.u32.totalorder %s492_s5, %s892_s1 }
  0x1d   : > { %p495_p11 = pnand %p494_p10, %p493_p5 }
  0x1f   : > { %p496_p1 = pneg %p495_p11 }
  0x21   : > { %p501_p12 = pnand %p499_p0, %p496_p1 }
  0x23   : > { %504 = shalt.err (!%p501_p12)
}
  0x24   : > { %s505_s16 = scalar_lea.vmem %s145_s25, 64  ;;  %p513_p7 = scmp.lt.s32.totalorder %s145_s25, %s145_s25 }
  0x25   : > { %p506_p9 = scmp.ne.s32.totalorder %s145_s25, %s505_s16  ;;  %p514_p13 = scmp.lt.s32.totalorder %s505_s16, %s505_s16 }
  0x27   : > { %p508_p8 = pnand %p506_p9, %p494_p10  ;;  %p515_p4 = por %p514_p13, %p513_p7 }
  0x29   : > { %p509_p3 = pneg %p508_p8 }
  0x2b   : > { %p516_p6 = pnand %p515_p4, %p509_p3 }
  0x2d   : > { %519 = shalt.err (!%p516_p6)
}
  0x2e   : > { %425 = dma.hbm_to_vmem [thread:$0]  (!%p739_p2), %s892_s1, 64, %s145_s25, [#allocation7]  }
  0x2f   : > { %p909_p9 = scmp.ne.s32.totalorder %s908_s29, 0  ;;  %s400_s3 = sshll.u32 %s155_s30, 4 }
  0x30   : > { %s412_s5 = sshll.u32 %s632_s13, 8  ;;  %s159_s8 = scalar_lea.vmem [#allocation3], %s400_s3 }
  0x31   : > { %s923_s28 = smov (%p909_p9, %s34_s28), 0  ;;  %s775_s7 = scalar_lea.hbm %s891_s0, %s412_s5 }
  0x32   : > { %s42_s4 = ssub.s32 %s632_s13, %s923_s28  ;;  %s169_s15 = sshll.u32 %s159_s8, 4  ;;  %s782_s15 = int_to_ptr.vmem [resolvable:$true] %s169_s15 }
  0x33   : > { %p47_p3 = scmp.eq.s32.totalorder %s42_s4, 0  ;;  %s784_s29 = scalar_lea.sflag [#allocation4], %s155_s30 }
  0x34   : > { %s520_s16 = scalar_lea.hbm %s775_s7, 256  ;;  %p910_p8 = scmp.ne.s32.totalorder %s906_s26, 0 }
  0x35   : > { %s780_s25 = scalar_select %p47_p3, %s624_s11, %s49_s17  }
  0x36   : > { %p521_p7 = scmp.ne.s32.totalorder %s775_s7, %s520_s16  ;;  %p522_p12 = pneg %p910_p8 }
  0x37   : > { %s525_s3 = scalar_lea.hbm %s891_s0, 512  ;;  %p526_p2 = scmp.lt.u32.totalorder %s775_s7, %s891_s0 }
  0x38   : > { %p523_p13 = pnand %p522_p12, %p521_p7  ;;  %p527_p6 = scmp.lt.u32.totalorder %s525_s3, %s520_s16 }
  0x39   : > { %p529_p10 = scmp.lt.u32.totalorder %s520_s16, %s775_s7 }
  0x3a   : > { %p524_p4 = pneg %p523_p13  ;;  %p528_p5 = por %p527_p6, %p526_p2 }
  0x3c   : > { %p530_p11 = por %p529_p10, %p528_p5 }
  0x3e   : > { %p531_p1 = pnand %p530_p11, %p524_p4 }
  0x40   : > { %534 = shalt.err (!%p531_p1)
}
  0x41   : > { %s535_s17 = scalar_lea.vmem %s782_s15, 256  ;;  %s639_s30 = smov [#allocation3]  }
  0x42   : > { %p536_p0 = scmp.ne.s32.totalorder %s782_s15, %s535_s17  ;;  %s540_s27 = sshll.u32 %s639_s30, 4  ;;  %s541_s27 = int_to_ptr.vmem [resolvable:$false] %s540_s27 }
  0x43   : > { %s542_s6 = scalar_lea.vmem %s541_s27, 512  ;;  %p543_p7 = scmp.lt.s32.totalorder %s782_s15, %s541_s27 }
  0x44   : > { %p538_p9 = pnand %p536_p0, %p522_p12  ;;  %p544_p13 = scmp.lt.s32.totalorder %s542_s6, %s535_s17 }
  0x46   : > { %p539_p3 = pneg %p538_p9  ;;  %p545_p2 = por %p544_p13, %p543_p7 }
  0x48   : > { %p546_p6 = pnand %p545_p2, %p539_p3 }
  0x4a   : > { %549 = shalt.err (!%p546_p6)
}
  0x4b   : > { %s640_s8 = smov 128   ;;  %s641_s16 = smov 8  }
  0x4c   : > { %429 = dma.hbm_to_vmem [thread:$0]  (!%p910_p8), %s775_s7, 256, %s782_s15, %s784_s29, %s640_s8, %s640_s8, %s641_s16  }
  0x4d   : > { %p911_p12 = scmp.ne.s32.totalorder %s905_s23, 0 }
  0x4e   : > { %s815_s19 = sand.u32 (!%p911_p12), 1, %s620_s10   ;;  %p912_p4 = scmp.ne.s32.totalorder (!%p911_p12), %s902_s20, 0 }
  0x4f   : > { %181 = sbr.rel (%p911_p12) target bundleno = 125 (0x7d), region = 28  ;;  %s404_s24 = sshll.u32 (!%p911_p12), %s815_s19, 4 }
  0x50   : > { %s184_s3 = scalar_lea.sflag (!%p911_p12), [#allocation4], %s815_s19  ;;  %s187_s4 = scalar_lea.vmem (!%p911_p12), [#allocation3], %s404_s24 }
  0x56   : > { %603 = dma.done.wait (%p912_p4), %s184_s3, 256  }
  0x57   : > { %605 = vsyncadd (%p912_p4), %s184_s3, 4294967040  ;;  %p913_p8 = scmp.ne.s32.totalorder %s900_s18, 0 }
  0x59   : > { %607 = dma.done.wait (%p913_p8), [#allocation7], 64  }
  0x5a   : > { %609 = vsyncadd (%p913_p8), [#allocation7], 4294967232  ;;  %vm218_vm0 = vcmask 261120   ;;  %v228_v0 = vlaneseq  ;;  %v642_v1 = vmov 0.0   ;;  %v220_v3 = vld [vmem:[%s187_s4] sm:$0xff]  ;;  %v221_v4 = vld [vmem:[%s187_s4 + $0x8] sm:$0xff] }
  0x5b   : > { %219 = vst.msk [vmem:[#allocation2] sm:$0xff] %vm218_vm0, %v642_v1  ;;  %223 = vst.msk [vmem:[#allocation2 + $0x8] sm:$0xff] %vm218_vm0, %v220_v3  ;;  %v225_v7 = vld [vmem:[#allocation6] sm:$0xf]  ;;  %s211_s18 = scalar_lea.vmem [#allocation8], %s404_s24  ;;  %s413_s23 = sshll.u32 %s628_s12, 8 }
  0x5c   : > { %v229_v2 = vshrl.u32 %v228_v0, 7  ;;  %224 = vst.msk [vmem:[#allocation2 + $0x10] sm:$0xff] %vm218_vm0, %v221_v4  ;;  %s291_s20 = sshll.u32 %s211_s18, 4  ;;  %s840_s15 = scalar_lea.hbm %s893_s2, %s413_s23  ;;  %s835_s20 = int_to_ptr.vmem [resolvable:$true] %s291_s20 }
  0x5d   : > { %s275_s12 = scalar_lea.sflag [#allocation5], %s815_s19  ;;  %s550_s29 = scalar_lea.vmem %s835_s20, 256 }
  0x5e   : > { %v230_v5 = vsub.s32 0, %v229_v2  ;;  %v238_v6 = vsub.s32 1, %v229_v2  ;;  %v248_v8 = vsub.s32 2, %v229_v2  ;;  %v258_v11 = vsub.s32 3, %v229_v2  ;;  %p551_p5 = scmp.ne.s32.totalorder %s835_s20, %s550_s29  ;;  %p914_p10 = scmp.ne.s32.totalorder %s903_s21, 0 }
  0x5f   : > { %s643_s5 = smov [#allocation8]  }
  0x60   : > { %v231_v9 = vrot.slane %v225_v7, %v230_v5  ;;  %v239_v10 = vrot.slane %v225_v7, %v238_v6  ;;  %v249_v12 = vrot.slane %v225_v7, %v248_v8  ;;  %v259_v18 = vrot.slane %v225_v7, %v258_v11  ;;  %p552_p11 = pnand %p551_p5, %p914_p10  ;;  %s554_s17 = sshll.u32 %s643_s5, 4  ;;  %s555_s17 = int_to_ptr.vmem [resolvable:$false] %s554_s17 }
  0x61   : > { %s556_s30 = scalar_lea.vmem %s555_s17, 512  ;;  %p557_p0 = scmp.lt.s32.totalorder %s835_s20, %s555_s17 }
  0x62   : > { %v226_v13 = vld [vmem:[#allocation2 + $0x5] sm:$0xff]  ;;  %p553_p1 = pneg %p552_p11  ;;  %p558_p9 = scmp.lt.s32.totalorder %s556_s30, %s550_s29 }
  0x63   : > { %v234_v14 = vld [vmem:[#allocation2 + $0x6] sm:$0xff]  ;;  %v232_v16 = vmul.f32 %v231_v9, %v226_v13  ;;  %v235_v20 = vld [vmem:[#allocation2 + $0xe] sm:$0xff] }
  0x64   : > { %v244_v15 = vld [vmem:[#allocation2 + $0x7] sm:$0xff]  ;;  %v240_v17 = vmul.f32 %v239_v10, %v234_v14  ;;  %v241_v23 = vmul.f32 %v239_v10, %v235_v20  ;;  %v245_v24 = vld [vmem:[#allocation2 + $0xf] sm:$0xff]  ;;  %p559_p3 = por %p558_p9, %p557_p0 }
  0x65   : > { %v227_v19 = vld [vmem:[#allocation2 + $0xd] sm:$0xff]  ;;  %v250_v26 = vmul.f32 %v249_v12, %v244_v15  ;;  %v251_v29 = vmul.f32 %v249_v12, %v245_v24 }
  0x66   : > { %v254_v21 = vld [vmem:[#allocation2 + $0x8] sm:$0xff]  ;;  %v233_v22 = vmul.f32 %v231_v9, %v227_v19  ;;  %v242_v25 = vadd.f32 %v240_v17, %v232_v16  ;;  %v255_v27 = vld [vmem:[#allocation2 + $0x10] sm:$0xff]  ;;  %p560_p7 = pnand %p559_p3, %p553_p1 }
  0x67   : > { %v260_v31 = vmul.f32 %v259_v18, %v254_v21  ;;  %v261_v33 = vmul.f32 %v259_v18, %v255_v27 }
  0x68   : > { %v243_v28 = vadd.f32 %v241_v23, %v233_v22  ;;  %v252_v30 = vadd.f32 %v250_v26, %v242_v25 }
  0x6a   : > { %v253_v32 = vadd.f32 %v251_v29, %v243_v28  ;;  %v262_v34 = vadd.f32 %v260_v31, %v252_v30 }
  0x6c   : > { %v263_v35 = vadd.f32 %v261_v33, %v253_v32  ;;  %264 = vst.msk [vmem:[%s211_s18] sm:$0xff] %vm218_vm0, %v262_v34 }
  0x6e   : > { %265 = vst.msk [vmem:[%s211_s18 + $0x8] sm:$0xff] %vm218_vm0, %v263_v35 }
  0x6f   : > { %563 = shalt.err (!%p560_p7)
}
  0x70   : > { %s564_s27 = scalar_lea.hbm %s840_s15, 256  ;;  %s568_s16 = scalar_lea.hbm %s893_s2, 512 }
  0x71   : > { %p565_p13 = scmp.ne.s32.totalorder %s840_s15, %s564_s27  ;;  %p569_p12 = scmp.lt.u32.totalorder %s840_s15, %s893_s2 }
  0x72   : > { %p570_p4 = scmp.lt.u32.totalorder %s568_s16, %s564_s27  ;;  %p572_p5 = scmp.lt.u32.totalorder %s564_s27, %s840_s15 }
  0x73   : > { %p566_p2 = pnand %p565_p13, %p914_p10 }
  0x74   : > { %p571_p8 = por %p570_p4, %p569_p12 }
  0x75   : > { %p567_p6 = pneg %p566_p2 }
  0x76   : > { %p573_p11 = por %p572_p5, %p571_p8 }
  0x78   : > { %p574_p1 = pnand %p573_p11, %p567_p6 }
  0x7a   : > { %577 = shalt.err (!%p574_p1)
}
  0x7b   : > { %s644_s4 = smov 128   ;;  %s645_s18 = smov 8  }
  0x7c   : > { %420 = dma.vmem_to_hbm [thread:$0]  (%p914_p10), %s835_s20, 256, %s840_s15, %s275_s12, %s644_s4, %s644_s4, %s645_s18  }
  0x7d PF: > { %s306_s23 = sand.u32 1, %s616_s9   ;;  %p915_p0 = scmp.ne.s32.totalorder %s904_s22, 0 }
  0x7e   : > { %p916_p9 = scmp.ge.s32.totalorder %s636_s14, 2  ;;  %s307_s26 = scalar_lea.sflag [#allocation5], %s306_s23 }
  0x80   : > { %p431_p3 = pnand %p916_p9, %p915_p0 }
  0x82   : > { %611 = dma.done.wait (!%p431_p3), %s307_s26, 256  }
  0x83   : > { %613 = vsyncadd (!%p431_p3), %s307_s26, 4294967040  ;;  %s19_s14 = sadd.s32 1, %s636_s14   ;;  %s917_s9 = smov %s620_s10 }
  0x84   : > { %p16_p7 = scmp.ge.s32.totalorder %s19_s14, 4   ;;  %s918_s10 = smov %s624_s11 }
  0x85   : > { %s919_s11 = smov %s780_s25  ;;  %s920_s12 = smov %s632_s13 }
  0x86   : > { %s921_s13 = smov %s923_s28  ;;  %18 = sbr.rel (!%p16_p7) target bundleno = 7 (0x7), region = 86 }
  0x8d   :  { %312 = vsyncpa [#allocation4], 1 }
  0x8e   :  { %314 = vsyncpa [#allocation4 + $0x1], 1 }
  0x8f   :  { %315 = vsyncpa [#allocation7], 1 }
  0x90   :  { %316 = vsyncpa [#allocation5], 1 }
  0x91   :  { %318 = vsyncpa [#allocation5 + $0x1], 1 }

</bundles_post_ra>
